<compile_context>
chip_gen: v7x
topology: tpu7x:2x2x1
jax: 0.10.0
libtpu: 0.0.40
codegen_flags: <defaults>
</compile_context>

<pallas_src>
import functools

import jax
import jax.numpy as jnp
from jax.experimental import pallas as pl
from jax.experimental.pallas import tpu as pltpu


def _layernorm_kernel(x_ref, g_ref, b_ref, o_ref, *, eps, features):
    # x_ref/o_ref: (tb, F) tile; g_ref/b_ref: (1, F) resident scale/shift.
    x = x_ref[...].astype(jnp.float32)

    # Two-pass mean/var over the real feature axis.  The block's last dim is the
    # full feature extent, so no padding mask / correction term is needed.
    mean = jnp.sum(x, axis=-1, keepdims=True) * (1.0 / features)
    diff = x - mean

    # torch.std default is unbiased (ddof=1).
    # NOTE: features == 1 would give NaN in torch; we clamp the denominator
    # instead (degenerate case, documented divergence).
    denom = max(features - 1, 1)
    var = jnp.sum(diff * diff, axis=-1, keepdims=True) * (1.0 / denom)
    std = jnp.sqrt(var)

    # eps is added OUTSIDE the sqrt, exactly as in the module.  Reciprocal only
    # on the (tb, 1) column (EUP); the (tb, F) work is plain VPU multiplies.
    inv = pl.reciprocal(std + eps, approx=False)

    g = g_ref[...].astype(jnp.float32)
    b = b_ref[...].astype(jnp.float32)
    o_ref[...] = (diff * inv * g + b).astype(o_ref.dtype)


def _vmem_capacity_bytes():
    # Best-effort physical (per-core) VMEM query; conservative v7x fallback.
    try:
        info = pltpu.get_tpu_info()
        cap = int(getattr(info, "vmem_capacity_bytes", 0))
        if cap > 0:
            return cap
    except Exception:
        pass
    return 64 * 1024 * 1024


def layer_norm(x, a_2, b_2, eps=1e-6, block_batch=None):
    """x: [batch, features] (extra leading dims are flattened). Matches the
    custom PyTorch module: unbiased std, eps added outside the sqrt."""
    orig_shape = x.shape
    features = orig_shape[-1]
    if x.ndim != 2:
        x = x.reshape(-1, features)
    batch = x.shape[0]

    out_dtype = x.dtype
    in_itemsize = jnp.dtype(x.dtype).itemsize
    out_itemsize = jnp.dtype(out_dtype).itemsize

    # Sublane packing for the row-tile dim (8 for f32, 16 for bf16, ...).
    sublane = 8 if in_itemsize >= 4 else (32 // in_itemsize)

    vmem_cap = _vmem_capacity_bytes()

    row_in = features * in_itemsize
    row_out = features * out_itemsize
    row_f32 = features * 4
    # Conservative per-row VMEM: double-buffered input + output, plus ~3 live
    # f32 intermediates (x, diff, out) inside the body.
    row_vmem = 2 * row_in + 2 * row_out + 3 * row_f32

    if block_batch is None:
        # Mem-bound kernel: target 4-8 MiB of HBM traffic per input buffer
        # (>= ~86% of roofline; amortizes ~0.35 us per grid step).  Larger
        # target on the 128 MiB-VMEM generations and for sub-4-byte dtypes.
        big_vmem = vmem_cap >= 96 * 1024 * 1024
        tgt = 8 * 1024 * 1024 if (big_vmem or in_itemsize < 4) else 4 * 1024 * 1024
        rows_by_traffic = max(1, tgt // max(row_in, 1))
        rows_by_vmem = max(1, (vmem_cap // 2) // max(row_vmem, 1))
        block_batch = min(rows_by_traffic, rows_by_vmem)

    # Prefer >=4 grid steps when the batch allows: the single "parallel" axis is
    # sharded across v7x's 2 TensorCores and the pipeline gets depth to overlap.
    # (Single-TC v5e/v6e: negligible cost.)
    min_steps = 4
    if batch >= min_steps * sublane:
        block_batch = min(block_batch, pl.cdiv(batch, min_steps))

    if block_batch >= batch:
        block_batch = batch  # single full-extent block (exempt from sublane rule)
    else:
        block_batch = max(sublane, (block_batch // sublane) * sublane)
    grid_steps = pl.cdiv(batch, block_batch)

    # Scoped-VMEM limit: tile-based estimate + 25% headroom, capped at ~70% of
    # physical VMEM (safe on v7x's 64 MiB; generous on 128 MiB v5e/v6e).
    est = block_batch * row_vmem + 4 * row_f32
    vmem_limit = int(min(vmem_cap * 7 // 10,
                         max(16 * 1024 * 1024, est * 5 // 4)))

    kernel = functools.partial(_layernorm_kernel, eps=eps, features=features)

    cost = pl.CostEstimate(
        flops=8 * batch * features,
        transcendentals=2 * batch,
        bytes_accessed=batch * features * (in_itemsize + out_itemsize)
        + 2 * features * jnp.dtype(a_2.dtype).itemsize,
    )

    out = pl.pallas_call(
        kernel,
        out_shape=jax.ShapeDtypeStruct((batch, features), out_dtype),
        grid_spec=pltpu.PrefetchScalarGridSpec(
            num_scalar_prefetch=0,
            grid=(grid_steps,),
            in_specs=[
                pl.BlockSpec((block_batch, features), lambda i: (i, 0)),
                pl.BlockSpec((1, features), lambda i: (0, 0)),
                pl.BlockSpec((1, features), lambda i: (0, 0)),
            ],
            out_specs=pl.BlockSpec((block_batch, features), lambda i: (i, 0)),
        ),
        compiler_params=pltpu.CompilerParams(
            dimension_semantics=("parallel",),
            vmem_limit_bytes=vmem_limit,
        ),
        cost_estimate=cost,
    )(x, a_2.reshape(1, features), b_2.reshape(1, features))

    if out.shape != orig_shape:
        out = out.reshape(orig_shape)
    return out


def _reference(x, a_2, b_2, eps):
    x32 = x.astype(jnp.float32)
    mean = jnp.mean(x32, axis=-1, keepdims=True)
    n = x.shape[-1]
    std = jnp.sqrt(jnp.sum((x32 - mean) ** 2, axis=-1, keepdims=True) / max(n - 1, 1))
    return (a_2 * (x32 - mean) / (std + eps) + b_2).astype(x.dtype)


if __name__ == "__main__":
    key = jax.random.PRNGKey(0)

    # Module spec: x.shape = [batch, feature].
    batch, features = 8, 32
    x = jax.random.normal(key, (batch, features), dtype=jnp.float32)
    # Deterministic parameter init exactly as in the module's __init__.
    a_2 = jnp.ones((features,), dtype=jnp.float32)
    b_2 = jnp.zeros((features,), dtype=jnp.float32)

    out = jax.block_until_ready(layer_norm(x, a_2, b_2, eps=1e-6))
    ref = _reference(x, a_2, b_2, 1e-6)
    assert out.shape == ref.shape
    assert jnp.allclose(out, ref, atol=1e-5, rtol=1e-5), "mismatch vs reference"

    # Multi-step grid, features not a multiple of 128, non-trivial affine params.
    x2 = jax.random.normal(jax.random.PRNGKey(1), (40, 96), dtype=jnp.float32) * 2.0 + 0.5
    g2 = jax.random.normal(jax.random.PRNGKey(2), (96,), dtype=jnp.float32)
    s2 = jax.random.normal(jax.random.PRNGKey(3), (96,), dtype=jnp.float32)
    out2 = jax.block_until_ready(layer_norm(x2, g2, s2, eps=1e-6))
    assert jnp.allclose(out2, _reference(x2, g2, s2, 1e-6), atol=1e-5, rtol=1e-5), \
        "mismatch vs reference (multi-step grid)"

    # Ragged final block: batch not a multiple of the row tile, no padding path.
    x3 = jax.random.normal(jax.random.PRNGKey(4), (45, 200), dtype=jnp.float32)
    g3 = jnp.ones((200,), dtype=jnp.float32)
    s3 = jnp.zeros((200,), dtype=jnp.float32)
    out3 = jax.block_until_ready(layer_norm(x3, g3, s3, eps=1e-6))
    assert jnp.allclose(out3, _reference(x3, g3, s3, 1e-6), atol=1e-5, rtol=1e-5), \
        "mismatch vs reference (ragged last block)"

    print("KERNEL_OK")
</pallas_src>

<mosaic_0001>
module attributes {stable_mosaic.version = 11 : i64} {
  func.func @_layernorm_kernel(%arg0: i32, %arg1: memref<8x32xf32, #tpu.memory_space<vmem>>, %arg2: memref<1x32xf32, #tpu.memory_space<vmem>>, %arg3: memref<1x32xf32, #tpu.memory_space<vmem>>, %arg4: memref<8x32xf32, #tpu.memory_space<vmem>>) attributes {dimension_semantics = [#tpu.dimension_semantics<parallel>], iteration_bounds = array<i64: 1>, scalar_prefetch = 0 : i64, scratch_operands = 0 : i64, tpu.core_type = #tpu.core_type<tc>, window_params = [{transform_indices = @transform_0, window_bounds = array<i64: 8, 32>}, {pipeline_mode = #tpu.pipeline_mode<synchronous>, transform_indices = @transform_1, window_bounds = array<i64: 1, 32>}, {pipeline_mode = #tpu.pipeline_mode<synchronous>, transform_indices = @transform_2, window_bounds = array<i64: 1, 32>}, {transform_indices = @transform_3, window_bounds = array<i64: 8, 32>}]} {
    %c0 = arith.constant 0 : index
    %c0_0 = arith.constant 0 : index
    %0 = vector.load %arg1[%c0, %c0_0] : memref<8x32xf32, #tpu.memory_space<vmem>>, vector<8x32xf32>
    %cst = arith.constant dense<0.000000e+00> : vector<8xf32>
    %1 = vector.multi_reduction <add>, %0, %cst [1] : vector<8x32xf32> to vector<8xf32>
    %2 = vector.shape_cast %1 : vector<8xf32> to vector<8x1xf32>
    %cst_1 = arith.constant 3.125000e-02 : f32
    %3 = vector.broadcast %cst_1 : f32 to vector<8x1xf32>
    %4 = arith.mulf %2, %3 : vector<8x1xf32>
    %5 = vector.broadcast %4 : vector<8x1xf32> to vector<8x32xf32>
    %6 = arith.subf %0, %5 : vector<8x32xf32>
    %7 = arith.mulf %6, %6 : vector<8x32xf32>
    %cst_2 = arith.constant dense<0.000000e+00> : vector<8xf32>
    %8 = vector.multi_reduction <add>, %7, %cst_2 [1] : vector<8x32xf32> to vector<8xf32>
    %9 = vector.shape_cast %8 : vector<8xf32> to vector<8x1xf32>
    %cst_3 = arith.constant 0.0322580636 : f32
    %10 = vector.broadcast %cst_3 : f32 to vector<8x1xf32>
    %11 = arith.mulf %9, %10 : vector<8x1xf32>
    %12 = math.sqrt %11 : vector<8x1xf32>
    %cst_4 = arith.constant 9.99999997E-7 : f32
    %13 = vector.broadcast %cst_4 : f32 to vector<8x1xf32>
    %14 = arith.addf %12, %13 : vector<8x1xf32>
    %15 = tpu.reciprocal %14 : vector<8x1xf32> -> vector<8x1xf32>
    %c0_5 = arith.constant 0 : index
    %c0_6 = arith.constant 0 : index
    %16 = vector.load %arg2[%c0_5, %c0_6] : memref<1x32xf32, #tpu.memory_space<vmem>>, vector<1x32xf32>
    %c0_7 = arith.constant 0 : index
    %c0_8 = arith.constant 0 : index
    %17 = vector.load %arg3[%c0_7, %c0_8] : memref<1x32xf32, #tpu.memory_space<vmem>>, vector<1x32xf32>
    %18 = vector.broadcast %15 : vector<8x1xf32> to vector<8x32xf32>
    %19 = arith.mulf %6, %18 : vector<8x32xf32>
    %20 = vector.broadcast %16 : vector<1x32xf32> to vector<8x32xf32>
    %21 = arith.mulf %19, %20 : vector<8x32xf32>
    %22 = vector.broadcast %17 : vector<1x32xf32> to vector<8x32xf32>
    %23 = arith.addf %21, %22 : vector<8x32xf32>
    %c0_9 = arith.constant 0 : index
    %c0_10 = arith.constant 0 : index
    %24 = vector.load %arg4[%c0_9, %c0_10] : memref<8x32xf32, #tpu.memory_space<vmem>>, vector<8x32xf32>
    tpu.vector_store %arg4[%c0_9, %c0_10], %23 {strides = array<i32>} : memref<8x32xf32, #tpu.memory_space<vmem>>, vector<8x32xf32>,
    return
  }
  func.func @transform_0(%arg0: i32) -> (i32, i32) {
    %c0_i32 = arith.constant 0 : i32
    %c0_i32_0 = arith.constant 0 : i32
    return %arg0, %c0_i32 : i32, i32
  }
  func.func @transform_1(%arg0: i32) -> (i32, i32) {
    %c0_i32 = arith.constant 0 : i32
    %c0_i32_0 = arith.constant 0 : i32
    %c0_i32_1 = arith.constant 0 : i32
    return %c0_i32, %c0_i32_0 : i32, i32
  }
  func.func @transform_2(%arg0: i32) -> (i32, i32) {
    %c0_i32 = arith.constant 0 : i32
    %c0_i32_0 = arith.constant 0 : i32
    %c0_i32_1 = arith.constant 0 : i32
    return %c0_i32, %c0_i32_0 : i32, i32
  }
  func.func @transform_3(%arg0: i32) -> (i32, i32) {
    %c0_i32 = arith.constant 0 : i32
    %c0_i32_0 = arith.constant 0 : i32
    return %arg0, %c0_i32 : i32, i32
  }
}

</mosaic_0001>

<bundles_post_ra>
// kernel: tpu_custom_call.1
= control target key start
LH: loop header
LB: loop body
LE: loop exit
PB: predicated region body
PF: predicated region fallthrough
CT: control target
= control target key end

     0   :  { %8 = vsyncpa [#allocation3], 0  ;;  %s192_s0 = inlined_call_operand.hbm [shape: f32[8,32], index: 0, kind: input, shape index: {}]   ;;  %s193_s1 = inlined_call_operand.vmem [shape: f32[1,32], index: 1, kind: input, shape index: {}]   ;;  %s194_s2 = inlined_call_operand.vmem [shape: f32[1,32], index: 2, kind: input, shape index: {}]   ;;  %s195_s3 = inlined_call_operand.hbm [shape: f32[8,32], index: 3, kind: output, shape index: {}]  }
   0x1   :  { %9 = vsyncpa [#allocation4], 0  ;;  %s137_s12 = smov [#allocation2]   ;;  %s89_s16 = scalar_lea.hbm %s192_s0, 128 }
   0x2   :  { %s16_s13 = sshll.u32 %s137_s12, 4  ;;  %p90_p0 = scmp.ne.s32.totalorder %s192_s0, %s89_s16  ;;  %s17_s13 = int_to_ptr.vmem [resolvable:$true] %s16_s13 }
   0x3   :  { %p93_p1 = scmp.lt.u32.totalorder %s89_s16, %s192_s0 }
   0x5   :  { %p95_p2 = pnand %p93_p1, %p90_p0 }
   0x7   :  { %98 = shalt.err (!%p95_p2)
}
   0x8   :  { %s99_s21 = scalar_lea.vmem %s17_s13, 128  ;;  %p104_p4 = scmp.lt.s32.totalorder %s17_s13, %s17_s13 }
   0x9   :  { %p100_p3 = scmp.ne.s32.totalorder %s17_s13, %s99_s21  ;;  %p105_p5 = scmp.lt.s32.totalorder %s99_s21, %s99_s21 }
   0xb   :  { %p106_p6 = por %p105_p5, %p104_p4 }
   0xd   :  { %p107_p7 = pnand %p106_p6, %p100_p3 }
   0xf   :  { %110 = shalt.err (!%p107_p7)
}
  0x10   :  { %19 = dma.hbm_to_vmem [thread:$0]  %s192_s0, 128, %s17_s13, [#allocation3]  }
  0x11   :  { %133 = dma.done.wait [#allocation3], 128  }
  0x12   :  { %134 = vsyncadd [#allocation3], 4294967168  ;;  %vm28_vm0 = vcmask 261120   ;;  %v27_v0 = vld [vmem:[#allocation2] sm:$0xff]  ;;  %s138_s27 = smov [#allocation5]  }
  0x13   :  { %v29_v1 = vsel %vm28_vm0, %v27_v0, 0.0  ;;  %v81_v16 = vld [vmem:[%s193_s1] ss:$0 sm:$0xff]  ;;  %s72_s28 = sshll.u32 %s138_s27, 4  ;;  %s73_s28 = int_to_ptr.vmem [resolvable:$true] %s72_s28 }
  0x14   :  { %30 = vadd.xlane.f32.xlu0 %v29_v1  ;;  %v82_v18 = vld [vmem:[%s194_s2] ss:$0 sm:$0xff]  ;;  %s111_s29 = scalar_lea.vmem %s73_s28, 128  ;;  %p116_p9 = scmp.lt.s32.totalorder %s73_s28, %s73_s28 }
  0x15   :  { %p112_p8 = scmp.ne.s32.totalorder %s73_s28, %s111_s29  ;;  %p117_p10 = scmp.lt.s32.totalorder %s111_s29, %s111_s29 }
  0x17   :  { %p118_p11 = por %p117_p10, %p116_p9 }
  0x19   :  { %p119_p12 = pnand %p118_p11, %p112_p8 }
  0xa1   :  { %v31_v2 = vpop.xlane.xlu0 %30 }
  0xa2   :  { %v32_v3 = vmul.f32 0.03125, %v31_v2 }
  0xa4   :  { %v33_v4 = vsub.f32 %v27_v0, %v32_v3 }
  0xa6   :  { %v34_v5 = vmul.f32 %v33_v4, %v33_v4 }
  0xa8   :  { %v35_v6 = vsel %vm28_vm0, %v34_v5, 0.0 }
  0xa9   :  { %36 = vadd.xlane.f32.xlu0 %v35_v6 }
 0x136   :  { %v37_v7 = vpop.xlane.xlu0 %36 }
 0x137   :  { %v38_v8 = vmul.f32 0.032258064, %v37_v7 }
 0x139   :  { %85 = vrsqrt.f32 %v38_v8  ;;  %vm41_vm1 = vcmp.eq.f32.partialorder %v38_v8, inf  ;;  %v44_v11 = vand.u32 2147483648, %v38_v8  ;;  %vm43_vm2 = vcmp.eq.f32.partialorder %v38_v8, 0.0 }
 0x143   :  { %v86_v9 = vpop.eup %85 }
 0x144   :  { %v40_v10 = vmul.f32 %v86_v9, %v38_v8 }
 0x146   :  { %v42_v12 = vsel %vm41_vm1, %v38_v8, %v40_v10 }
 0x147   :  { %v45_v13 = vsel %vm43_vm2, %v44_v11, %v42_v12 }
 0x148   :  { %v46_v14 = vadd.f32 1e-06, %v45_v13 }
 0x14a   :  { %87 = vrcp.f32 %v46_v14 }
 0x154   :  { %v88_v15 = vpop.eup %87 }
 0x155   :  { %v50_v17 = vmul.f32 %v88_v15, %v33_v4 }
 0x157   :  { %v57_v19 = vmul.f32 %v81_v16, %v50_v17 }
 0x159   :  { %v64_v20 = vadd.f32 %v82_v18, %v57_v19 }
 0x15b   :  { %65 = vst.msk [vmem:[#allocation5] sm:$0xff] %vm28_vm0, %v64_v20 }
 0x15c   :  { %122 = shalt.err (!%p119_p12)
}
 0x15d   :  { %s123_s4 = scalar_lea.hbm %s195_s3, 128 }
 0x15e   :  { %p124_p13 = scmp.ne.s32.totalorder %s195_s3, %s123_s4  ;;  %p127_p0 = scmp.lt.u32.totalorder %s123_s4, %s195_s3 }
 0x160   :  { %p129_p1 = pnand %p127_p0, %p124_p13 }
 0x162   :  { %132 = shalt.err (!%p129_p1)
}
 0x163   :  { %75 = dma.vmem_to_hbm [thread:$0]  %s73_s28, 128, %s195_s3, [#allocation4]  }
 0x164   :  { %135 = dma.done.wait [#allocation4], 128  }
 0x165   :  { %136 = vsyncadd [#allocation4], 4294967168 }
 0x166   :  { %79 = vsyncpa [#allocation3], 1 }
 0x167   :  { %80 = vsyncpa [#allocation4], 1 }

</bundles_post_ra>
